<compile_context>
chip_gen: v6e
topology: v6e:2x2x1
jax: 0.10.0
libtpu: 0.0.40
codegen_flags: <defaults>
</compile_context>

<pallas_src>
import functools

import numpy as np
import jax
import jax.numpy as jnp
from jax.experimental import pallas as pl
from jax.experimental.pallas import tpu as pltpu


def _loss_kernel(moments_ref, alpha_ref, ref_ref, loss_ref,
                 acc_a, acc_ar, acc_aw, acc_ah, *, tile_h, inv_n_bhw):
    """Row-band silhouette-loss step.

    moments_ref: (2,)            f32 SMEM -- [mean(ref*help_w), mean(ref*help_h)] (precomputed)
    alpha_ref:   (B, tile_h, W)  f32 VMEM -- image[..., 3] row band
    ref_ref:     (tile_h, W)     f32 VMEM -- image_ref row band
    loss_ref:    (1,)            f32 SMEM -- scalar output
    acc_*:       (1, 1)          f32 VMEM scratch accumulators (persist across grid steps)
    """
    i = pl.program_id(0)

    @pl.when(i == 0)
    def _init():
        acc_a[...] = jnp.zeros_like(acc_a)
        acc_ar[...] = jnp.zeros_like(acc_ar)
        acc_aw[...] = jnp.zeros_like(acc_aw)
        acc_ah[...] = jnp.zeros_like(acc_ah)

    alpha = alpha_ref[...]                                  # (B, tile_h, W)
    ref = ref_ref[...]                                      # (tile_h, W)
    th, w = ref.shape

    # Batch-sum first; every remaining product is a single (tile_h, W) or 1-D op.
    alpha_b = jnp.sum(alpha, axis=0)                        # (tile_h, W)

    # Axis-first reductions: only s_ar needs a full (tile_h, W) multiply.
    rowsum = jnp.sum(alpha_b, axis=1, keepdims=True)        # (tile_h, 1)
    colsum = jnp.sum(alpha_b, axis=0, keepdims=True)        # (1, W)

    # Coordinate helpers regenerated in-kernel (global row index = tile offset + local iota).
    row_idx = (jax.lax.broadcasted_iota(jnp.int32, (th, 1), 0)
               + i * tile_h).astype(jnp.float32)            # (tile_h, 1)
    col_idx = jax.lax.broadcasted_iota(jnp.int32, (1, w), 1).astype(jnp.float32)  # (1, W)

    acc_a[...] = acc_a[...] + jnp.sum(rowsum, keepdims=True)            # sum(alpha)
    acc_ar[...] = acc_ar[...] + jnp.sum(alpha_b * ref, keepdims=True)   # sum(alpha * ref)
    acc_aw[...] = acc_aw[...] + jnp.sum(rowsum * row_idx, keepdims=True)  # sum(alpha * help_w)
    acc_ah[...] = acc_ah[...] + jnp.sum(colsum * col_idx, keepdims=True)  # sum(alpha * help_h)

    @pl.when(i == pl.num_programs(0) - 1)
    def _finalize():
        loss_inter = (acc_ar[...] / acc_a[...] - 0.5) ** 2              # (1, 1)
        m_aw = acc_aw[...] * inv_n_bhw                                  # mean(alpha * help_w)
        m_ah = acc_ah[...] * inv_n_bhw                                  # mean(alpha * help_h)
        loss_center = ((m_aw - moments_ref[0]) ** 2
                       + (m_ah - moments_ref[1]) ** 2)                  # (1, 1)
        loss_ref[0] = jnp.sum(loss_inter + loss_center)


def _num_row_tiles(h):
    """Few grid steps (DMA/compute overlap) while keeping row blocks a multiple of 8."""
    for n in (4, 2):
        if h % n == 0 and (h // n) % 8 == 0:
            return n
    return 1


@jax.jit
def silhouette_loss(image, image_ref):
    """image: (B, H, W, 4) f32 NHWC; image_ref: (1, H, W) f32.  Returns (loss, image)."""
    B, H, W, _ = image.shape

    # Alpha channel.  allow_input_fusion on this operand lets XLA fuse the channel slice into
    # the Pallas operand DMA instead of writing a separate (B, H, W) array to HBM first.
    alpha = image[..., 3]                                   # (B, H, W)
    ref2d = image_ref[0]                                    # (H, W)

    # image_ref-only moments (constant across the optimization loop): tiny axis-first XLA
    # reduces, handed to the kernel as two SMEM scalars.
    row_idx = jnp.arange(H, dtype=jnp.float32)
    col_idx = jnp.arange(W, dtype=jnp.float32)
    inv_n_hw = jnp.float32(1.0 / (H * W))
    m_rw = jnp.sum(jnp.sum(ref2d, axis=1) * row_idx) * inv_n_hw   # mean(ref * help_w)
    m_rh = jnp.sum(jnp.sum(ref2d, axis=0) * col_idx) * inv_n_hw   # mean(ref * help_h)
    moments = jnp.stack([m_rw, m_rh]).astype(jnp.float32)         # (2,)

    n_tiles = _num_row_tiles(H)
    tile_h = H // n_tiles

    kernel = functools.partial(_loss_kernel, tile_h=tile_h,
                               inv_n_bhw=float(1.0 / (B * H * W)))

    loss = pl.pallas_call(
        kernel,
        out_shape=jax.ShapeDtypeStruct((1,), jnp.float32),
        grid=(n_tiles,),
        in_specs=[
            pl.BlockSpec(memory_space=pltpu.SMEM),                   # precomputed ref moments
            pl.BlockSpec((B, tile_h, W), lambda i: (0, i, 0)),       # alpha row band
            pl.BlockSpec((tile_h, W), lambda i: (i, 0)),             # image_ref row band
        ],
        out_specs=pl.BlockSpec(memory_space=pltpu.SMEM),
        scratch_shapes=[pltpu.VMEM((1, 1), jnp.float32)] * 4,
        compiler_params=pltpu.CompilerParams(
            dimension_semantics=("arbitrary",),
            allow_input_fusion=[False, True, False],
        ),
    )(moments, alpha, ref2d)

    return loss[0], image


def _reference_loss_f64(image, image_ref):
    """Float64 numpy reference of Model.forward's loss (PyTorch does loss_center in float64)."""
    image = np.asarray(image, dtype=np.float64)       # (B, H, W, 4)
    ref = np.asarray(image_ref, dtype=np.float64)     # (1, H, W)
    _, H, W, _ = image.shape
    alpha = image[..., 3]                             # (B, H, W)
    help_w = np.broadcast_to(np.arange(H, dtype=np.float64)[:, None], (H, W))[None]
    help_h = np.broadcast_to(np.arange(W, dtype=np.float64)[None, :], (H, W))[None]
    loss_inter = (np.sum(alpha * ref) / np.sum(alpha) - 0.5) ** 2
    loss_center = ((np.mean(alpha * help_w) - np.mean(ref * help_w)) ** 2
                   + (np.mean(alpha * help_h) - np.mean(ref * help_h)) ** 2)
    return float(loss_inter + loss_center)


if __name__ == "__main__":
    # Small shapes consistent with the module's (1, 480, 640) buffers: B=1, H=64, W=128.
    B, H, W = 1, 64, 128

    key = jax.random.PRNGKey(0)
    k_img, k_ref = jax.random.split(key)

    # Synthetic "rendered" RGBA image (stand-in for the PyTorch3D renderer output).
    image = jax.nn.sigmoid(jax.random.normal(k_img, (B, H, W, 4), dtype=jnp.float32))
    # Synthetic binary reference silhouette (the `image_ref` buffer).
    image_ref = (jax.random.uniform(k_ref, (1, H, W)) > 0.5).astype(jnp.float32)

    loss, img_out = silhouette_loss(image, image_ref)
    loss = jax.block_until_ready(loss)
    img_out = jax.block_until_ready(img_out)

    ref64 = _reference_loss_f64(image, image_ref)
    loss_val = float(loss)

    assert img_out.shape == (B, H, W, 4)
    # Tolerance sized for float32 accumulation of cancellation-heavy terms vs the float64 truth.
    assert abs(loss_val - ref64) <= 1e-4 + 1e-3 * abs(ref64), (loss_val, ref64)

    print("KERNEL_OK")
</pallas_src>

<mosaic_0001>
module attributes {stable_mosaic.version = 11 : i64} {
  func.func @_loss_kernel(%arg0: i32, %arg1: memref<2xf32, #tpu.memory_space<smem>>, %arg2: memref<1x16x128xf32, #tpu.memory_space<vmem>>, %arg3: memref<16x128xf32, #tpu.memory_space<vmem>>, %arg4: memref<1xf32, #tpu.memory_space<smem>>, %arg5: memref<1x1xf32, #tpu.memory_space<vmem>>, %arg6: memref<1x1xf32, #tpu.memory_space<vmem>>, %arg7: memref<1x1xf32, #tpu.memory_space<vmem>>, %arg8: memref<1x1xf32, #tpu.memory_space<vmem>>) attributes {dimension_semantics = [#tpu.dimension_semantics<arbitrary>], iteration_bounds = array<i64: 4>, scalar_prefetch = 0 : i64, scratch_operands = 4 : i64, tpu.core_type = #tpu.core_type<tc>, window_params = [{transform_indices = @transform_0, window_bounds = array<i64: 2>}, {transform_indices = @transform_1, window_bounds = array<i64: 1, 16, 128>}, {transform_indices = @transform_2, window_bounds = array<i64: 16, 128>}, {transform_indices = @transform_3, window_bounds = array<i64: 1>}]} {
    %c0_i32 = arith.constant 0 : i32
    %0 = arith.cmpi eq, %arg0, %c0_i32 : i32
    %1 = arith.extui %0 : i1 to i32
    %c0_i32_0 = arith.constant 0 : i32
    %2 = arith.cmpi ne, %1, %c0_i32_0 : i32
    scf.if %2 {
      %cst_28 = arith.constant 0.000000e+00 : f32
      %55 = vector.broadcast %cst_28 : f32 to vector<1x1xf32>
      %c0_29 = arith.constant 0 : index
      %c0_30 = arith.constant 0 : index
      %56 = vector.load %arg5[%c0_29, %c0_30] : memref<1x1xf32, #tpu.memory_space<vmem>>, vector<1x1xf32>
      tpu.vector_store %arg5[%c0_29, %c0_30], %55 {strides = array<i32>} : memref<1x1xf32, #tpu.memory_space<vmem>>, vector<1x1xf32>,
      %cst_31 = arith.constant 0.000000e+00 : f32
      %57 = vector.broadcast %cst_31 : f32 to vector<1x1xf32>
      %c0_32 = arith.constant 0 : index
      %c0_33 = arith.constant 0 : index
      %58 = vector.load %arg6[%c0_32, %c0_33] : memref<1x1xf32, #tpu.memory_space<vmem>>, vector<1x1xf32>
      tpu.vector_store %arg6[%c0_32, %c0_33], %57 {strides = array<i32>} : memref<1x1xf32, #tpu.memory_space<vmem>>, vector<1x1xf32>,
      %cst_34 = arith.constant 0.000000e+00 : f32
      %59 = vector.broadcast %cst_34 : f32 to vector<1x1xf32>
      %c0_35 = arith.constant 0 : index
      %c0_36 = arith.constant 0 : index
      %60 = vector.load %arg7[%c0_35, %c0_36] : memref<1x1xf32, #tpu.memory_space<vmem>>, vector<1x1xf32>
      tpu.vector_store %arg7[%c0_35, %c0_36], %59 {strides = array<i32>} : memref<1x1xf32, #tpu.memory_space<vmem>>, vector<1x1xf32>,
      %cst_37 = arith.constant 0.000000e+00 : f32
      %61 = vector.broadcast %cst_37 : f32 to vector<1x1xf32>
      %c0_38 = arith.constant 0 : index
      %c0_39 = arith.constant 0 : index
      %62 = vector.load %arg8[%c0_38, %c0_39] : memref<1x1xf32, #tpu.memory_space<vmem>>, vector<1x1xf32>
      tpu.vector_store %arg8[%c0_38, %c0_39], %61 {strides = array<i32>} : memref<1x1xf32, #tpu.memory_space<vmem>>, vector<1x1xf32>,
    } else {
    }
    %c0 = arith.constant 0 : index
    %c0_1 = arith.constant 0 : index
    %c0_2 = arith.constant 0 : index
    %3 = vector.load %arg2[%c0, %c0_1, %c0_2] : memref<1x16x128xf32, #tpu.memory_space<vmem>>, vector<1x16x128xf32>
    %c0_3 = arith.constant 0 : index
    %c0_4 = arith.constant 0 : index
    %4 = vector.load %arg3[%c0_3, %c0_4] : memref<16x128xf32, #tpu.memory_space<vmem>>, vector<16x128xf32>
    %cst = arith.constant dense<0.000000e+00> : vector<16x128xf32>
    %5 = vector.multi_reduction <add>, %3, %cst [0] : vector<1x16x128xf32> to vector<16x128xf32>
    %cst_5 = arith.constant dense<0.000000e+00> : vector<16xf32>
    %6 = vector.multi_reduction <add>, %5, %cst_5 [1] : vector<16x128xf32> to vector<16xf32>
    %7 = vector.shape_cast %6 : vector<16xf32> to vector<16x1xf32>
    %cst_6 = arith.constant dense<0.000000e+00> : vector<128xf32>
    %8 = vector.multi_reduction <add>, %5, %cst_6 [0] : vector<16x128xf32> to vector<128xf32>
    %9 = vector.shape_cast %8 : vector<128xf32> to vector<1x128xf32>
    %10 = tpu.iota {dimensions = array<i32: 0>} : vector<16x1xi32>
    %c16_i32 = arith.constant 16 : i32
    %11 = arith.muli %arg0, %c16_i32 : i32
    %12 = vector.broadcast %11 : i32 to vector<16x1xi32>
    %13 = arith.addi %10, %12 : vector<16x1xi32>
    %14 = arith.sitofp %13 : vector<16x1xi32> to vector<16x1xf32>
    %15 = tpu.iota {dimensions = array<i32: 1>} : vector<1x128xi32>
    %16 = arith.sitofp %15 : vector<1x128xi32> to vector<1x128xf32>
    %c0_7 = arith.constant 0 : index
    %c0_8 = arith.constant 0 : index
    %17 = vector.load %arg5[%c0_7, %c0_8] : memref<1x1xf32, #tpu.memory_space<vmem>>, vector<1x1xf32>
    %18 = vector.shape_cast %7 : vector<16x1xf32> to vector<1x16x1xf32>
    %cst_9 = arith.constant dense<0.000000e+00> : vector<1xf32>
    %19 = vector.multi_reduction <add>, %18, %cst_9 [1, 2] : vector<1x16x1xf32> to vector<1xf32>
    %20 = vector.shape_cast %19 : vector<1xf32> to vector<1x1x1xf32>
    %21 = vector.extract %20[0, 0, 0] : f32 from vector<1x1x1xf32>
    %22 = vector.broadcast %21 : f32 to vector<1x1xf32>
    %23 = arith.addf %17, %22 : vector<1x1xf32>
    %c0_10 = arith.constant 0 : index
    %c0_11 = arith.constant 0 : index
    %24 = vector.load %arg5[%c0_10, %c0_11] : memref<1x1xf32, #tpu.memory_space<vmem>>, vector<1x1xf32>
    tpu.vector_store %arg5[%c0_10, %c0_11], %23 {strides = array<i32>} : memref<1x1xf32, #tpu.memory_space<vmem>>, vector<1x1xf32>,
    %c0_12 = arith.constant 0 : index
    %c0_13 = arith.constant 0 : index
    %25 = vector.load %arg6[%c0_12, %c0_13] : memref<1x1xf32, #tpu.memory_space<vmem>>, vector<1x1xf32>
    %26 = arith.mulf %5, %4 : vector<16x128xf32>
    %27 = vector.shape_cast %26 : vector<16x128xf32> to vector<1x16x128xf32>
    %cst_14 = arith.constant dense<0.000000e+00> : vector<1xf32>
    %28 = vector.multi_reduction <add>, %27, %cst_14 [1, 2] : vector<1x16x128xf32> to vector<1xf32>
    %29 = vector.shape_cast %28 : vector<1xf32> to vector<1x1x1xf32>
    %30 = vector.extract %29[0, 0, 0] : f32 from vector<1x1x1xf32>
    %31 = vector.broadcast %30 : f32 to vector<1x1xf32>
    %32 = arith.addf %25, %31 : vector<1x1xf32>
    %c0_15 = arith.constant 0 : index
    %c0_16 = arith.constant 0 : index
    %33 = vector.load %arg6[%c0_15, %c0_16] : memref<1x1xf32, #tpu.memory_space<vmem>>, vector<1x1xf32>
    tpu.vector_store %arg6[%c0_15, %c0_16], %32 {strides = array<i32>} : memref<1x1xf32, #tpu.memory_space<vmem>>, vector<1x1xf32>,
    %c0_17 = arith.constant 0 : index
    %c0_18 = arith.constant 0 : index
    %34 = vector.load %arg7[%c0_17, %c0_18] : memref<1x1xf32, #tpu.memory_space<vmem>>, vector<1x1xf32>
    %35 = arith.mulf %7, %14 : vector<16x1xf32>
    %36 = vector.shape_cast %35 : vector<16x1xf32> to vector<1x16x1xf32>
    %cst_19 = arith.constant dense<0.000000e+00> : vector<1xf32>
    %37 = vector.multi_reduction <add>, %36, %cst_19 [1, 2] : vector<1x16x1xf32> to vector<1xf32>
    %38 = vector.shape_cast %37 : vector<1xf32> to vector<1x1x1xf32>
    %39 = vector.extract %38[0, 0, 0] : f32 from vector<1x1x1xf32>
    %40 = vector.broadcast %39 : f32 to vector<1x1xf32>
    %41 = arith.addf %34, %40 : vector<1x1xf32>
    %c0_20 = arith.constant 0 : index
    %c0_21 = arith.constant 0 : index
    %42 = vector.load %arg7[%c0_20, %c0_21] : memref<1x1xf32, #tpu.memory_space<vmem>>, vector<1x1xf32>
    tpu.vector_store %arg7[%c0_20, %c0_21], %41 {strides = array<i32>} : memref<1x1xf32, #tpu.memory_space<vmem>>, vector<1x1xf32>,
    %c0_22 = arith.constant 0 : index
    %c0_23 = arith.constant 0 : index
    %43 = vector.load %arg8[%c0_22, %c0_23] : memref<1x1xf32, #tpu.memory_space<vmem>>, vector<1x1xf32>
    %44 = arith.mulf %9, %16 : vector<1x128xf32>
    %45 = vector.shape_cast %44 : vector<1x128xf32> to vector<1x1x128xf32>
    %cst_24 = arith.constant dense<0.000000e+00> : vector<1xf32>
    %46 = vector.multi_reduction <add>, %45, %cst_24 [1, 2] : vector<1x1x128xf32> to vector<1xf32>
    %47 = vector.shape_cast %46 : vector<1xf32> to vector<1x1x1xf32>
    %48 = vector.extract %47[0, 0, 0] : f32 from vector<1x1x1xf32>
    %49 = vector.broadcast %48 : f32 to vector<1x1xf32>
    %50 = arith.addf %43, %49 : vector<1x1xf32>
    %c0_25 = arith.constant 0 : index
    %c0_26 = arith.constant 0 : index
    %51 = vector.load %arg8[%c0_25, %c0_26] : memref<1x1xf32, #tpu.memory_space<vmem>>, vector<1x1xf32>
    tpu.vector_store %arg8[%c0_25, %c0_26], %50 {strides = array<i32>} : memref<1x1xf32, #tpu.memory_space<vmem>>, vector<1x1xf32>,
    %c3_i32 = arith.constant 3 : i32
    %52 = arith.cmpi eq, %arg0, %c3_i32 : i32
    %53 = arith.extui %52 : i1 to i32
    %c0_i32_27 = arith.constant 0 : i32
    %54 = arith.cmpi ne, %53, %c0_i32_27 : i32
    scf.if %54 {
      %c0_28 = arith.constant 0 : index
      %c0_29 = arith.constant 0 : index
      %55 = vector.load %arg6[%c0_28, %c0_29] : memref<1x1xf32, #tpu.memory_space<vmem>>, vector<1x1xf32>
      %c0_30 = arith.constant 0 : index
      %c0_31 = arith.constant 0 : index
      %56 = vector.load %arg5[%c0_30, %c0_31] : memref<1x1xf32, #tpu.memory_space<vmem>>, vector<1x1xf32>
      %57 = arith.divf %55, %56 : vector<1x1xf32>
      %cst_32 = arith.constant 5.000000e-01 : f32
      %58 = vector.broadcast %cst_32 : f32 to vector<1x1xf32>
      %59 = arith.subf %57, %58 : vector<1x1xf32>
      %60 = arith.mulf %59, %59 : vector<1x1xf32>
      %c0_33 = arith.constant 0 : index
      %c0_34 = arith.constant 0 : index
      %61 = vector.load %arg7[%c0_33, %c0_34] : memref<1x1xf32, #tpu.memory_space<vmem>>, vector<1x1xf32>
      %cst_35 = arith.constant 1.22070313E-4 : f32
      %62 = vector.broadcast %cst_35 : f32 to vector<1x1xf32>
      %63 = arith.mulf %61, %62 : vector<1x1xf32>
      %c0_36 = arith.constant 0 : index
      %c0_37 = arith.constant 0 : index
      %64 = vector.load %arg8[%c0_36, %c0_37] : memref<1x1xf32, #tpu.memory_space<vmem>>, vector<1x1xf32>
      %cst_38 = arith.constant 1.22070313E-4 : f32
      %65 = vector.broadcast %cst_38 : f32 to vector<1x1xf32>
      %66 = arith.mulf %64, %65 : vector<1x1xf32>
      %c0_39 = arith.constant 0 : index
      %67 = memref.load %arg1[%c0_39] : memref<2xf32, #tpu.memory_space<smem>>
      %68 = vector.broadcast %67 : f32 to vector<1x1xf32>
      %69 = arith.subf %63, %68 : vector<1x1xf32>
      %70 = arith.mulf %69, %69 : vector<1x1xf32>
      %c1 = arith.constant 1 : index
      %71 = memref.load %arg1[%c1] : memref<2xf32, #tpu.memory_space<smem>>
      %72 = vector.broadcast %71 : f32 to vector<1x1xf32>
      %73 = arith.subf %66, %72 : vector<1x1xf32>
      %74 = arith.mulf %73, %73 : vector<1x1xf32>
      %75 = arith.addf %70, %74 : vector<1x1xf32>
      %76 = arith.addf %60, %75 : vector<1x1xf32>
      %77 = vector.shape_cast %76 : vector<1x1xf32> to vector<1x1x1xf32>
      %cst_40 = arith.constant dense<0.000000e+00> : vector<1xf32>
      %78 = vector.multi_reduction <add>, %77, %cst_40 [1, 2] : vector<1x1x1xf32> to vector<1xf32>
      %79 = vector.shape_cast %78 : vector<1xf32> to vector<1x1x1xf32>
      %80 = vector.extract %79[0, 0, 0] : f32 from vector<1x1x1xf32>
      %c0_41 = arith.constant 0 : index
      %81 = memref.load %arg4[%c0_41] : memref<1xf32, #tpu.memory_space<smem>>
      memref.store %80, %arg4[%c0_41] : memref<1xf32, #tpu.memory_space<smem>>
    } else {
    }
    return
  }
  func.func @transform_0(%arg0: i32) -> i32 {
    %c0_i32 = arith.constant 0 : i32
    %c0_i32_0 = arith.constant 0 : i32
    return %c0_i32 : i32
  }
  func.func @transform_1(%arg0: i32) -> (i32, i32, i32) {
    %c0_i32 = arith.constant 0 : i32
    %c0_i32_0 = arith.constant 0 : i32
    %c0_i32_1 = arith.constant 0 : i32
    return %c0_i32, %arg0, %c0_i32_0 : i32, i32, i32
  }
  func.func @transform_2(%arg0: i32) -> (i32, i32) {
    %c0_i32 = arith.constant 0 : i32
    %c0_i32_0 = arith.constant 0 : i32
    return %arg0, %c0_i32 : i32, i32
  }
  func.func @transform_3(%arg0: i32) -> i32 {
    %c0_i32 = arith.constant 0 : i32
    %c0_i32_0 = arith.constant 0 : i32
    return %c0_i32 : i32
  }
}

</mosaic_0001>

<bundles_post_ra>
// kernel: silhouette_loss.1
= control target key start
LH: loop header
LB: loop body
LE: loop exit
PB: predicated region body
PF: predicated region fallthrough
CT: control target
= control target key end

     0   :  { %8 = vsyncpa [#allocation8], 0  ;;  %s571_s0 = inlined_call_operand.vmem [shape: f32[2], index: 0, kind: input, shape index: {}]   ;;  %s572_s1 = inlined_call_operand.vmem [shape: f32[1,64,128], index: 1, kind: input, shape index: {}]   ;;  %s573_s2 = inlined_call_operand.vmem [shape: f32[64,128], index: 2, kind: input, shape index: {}]   ;;  %s574_s3 = inlined_call_operand.hbm [shape: f32[1], index: 3, kind: output, shape index: {}]  }
   0x1   :  { %9 = vsyncpa [#allocation7], 0  ;;  %s520_s12 = smov 0  }
   0x2 LB: > { %s526_s13 = sadd.s32 4294967295, %s495_s12   ;;  %p399_p0 = scmp.ge.s32.totalorder %s495_s12, 1  ;;  %s495_s12 = sphi %s520_s12, %s15_s12  }
   0x3   : > { %p114_p1 = scmp.lt.s32.totalorder %s495_s12, 5  ;;  %s127_s16 = sshll.u32 %s571_s0, 4  ;;  %s128_s16 = int_to_ptr.vmem [resolvable:$true] %s127_s16 }
   0x4   : > { %p439_p4 = scmp.eq.s32.totalorder %s526_s13, 0  ;;  %s456_s18 = scalar_lea.vmem %s128_s16, 16 }
   0x5   : > { %p534_p3 = pnand %p399_p0, %p114_p1  ;;  %p457_p7 = scmp.ne.s32.totalorder %s128_s16, %s456_s18 }
   0x6   : > { %p464_p11 = scmp.lt.s32.totalorder %s128_s16, %s128_s16  ;;  %p465_p12 = scmp.lt.s32.totalorder %s456_s18, %s456_s18 }
   0x7   : > { %p435_p5 = pneg %p534_p3 }
   0x8   : > { %p466_p13 = por %p465_p12, %p464_p11 }
   0x9   : > { %p436_p6 = pnand %p439_p4, %p435_p5 }
   0xb   : > { %p458_p8 = pneg %p436_p6 }
   0xd   : > { %p459_p9 = pnand %p458_p8, %p457_p7 }
   0xf   : > { %p460_p10 = pneg %p459_p9 }
  0x11   : > { %p467_p2 = pnand %p466_p13, %p460_p10 }
  0x13   : > { %470 = shalt.err (!%p467_p2)
}
  0x14   : > { %s497_s19 = smov [#allocation6]   ;;  %158 = sbr.rel (%p534_p3) target bundleno = 474 (0x1da), region = 32 }
  0x15   : > { %438 = dma.vmem_to_smem (!%p436_p6), %s128_s16, 16, %s497_s19, [#allocation8]  }
  0x19   : > { %486 = dma.done.wait (%p439_p4), [#allocation8], 16  }
  0x1a   : > { %488 = vsyncadd (%p439_p4), [#allocation8], 4294967280 }
  0x1b   : > { %164 = sfence }
  0x1c   : > { %s404_s20 = sshll.u32 %s526_s13, 1  ;;  %p576_p1 = scmp.ne.s32.totalorder %s526_s13, 0 }
  0x1d   : > { %p184_p0 = scmp.lt.s32.totalorder %s404_s20, 7 }
  0x1e   : > { %198 = sbr.rel (%p576_p1) target bundleno = 38 (0x26), region = 40 }
  0x1f   : > { %s578_s20 = smov (!%p184_p0, %s404_s20), 7 }
  0x20   : > { %s405_s21 = sshll.u32 %s578_s20, 3 }
  0x21   : > { %s187_s24 = scalar_lea.vmem %s572_s1, %s405_s21  ;;  %s193_s27 = scalar_lea.vmem %s573_s2, %s405_s21 }
  0x23   : > { %vm199_vm0 = vcmask 0   ;;  %v498_v0 = vmov 0.0  }
  0x24   : > { %200 = vst.msk [vmem:[#allocation2] sm:$0x1] %vm199_vm0, %v498_v0  ;;  %201 = vst.msk [vmem:[#allocation3] sm:$0x1] %vm199_vm0, %v498_v0 }
  0x25   : > { %202 = vst.msk [vmem:[#allocation4] sm:$0x1] %vm199_vm0, %v498_v0  ;;  %203 = vst.msk [vmem:[#allocation5] sm:$0x1] %vm199_vm0, %v498_v0 }
  0x26 PF: > { %v204_v1 = vld [vmem:[%s187_s24] sm:$0xff]  ;;  %v205_v2 = vld [vmem:[%s187_s24 + $0x8] sm:$0xff]  ;;  %v221_v11 = vlaneseq  ;;  %s409_s28 = sshll.u32 %s526_s13, 4  ;;  %vm234_vm1 = vcmask 7168   ;;  %vm287_vm2 = vcmask 1040384   ;;  %vm249_vm3 = vcmask 0  }
  0x27   : > { %v206_v3 = vld [vmem:[%s193_s27] sm:$0xff]  ;;  %210 = vadd.xlane.f32.xlu0 %v204_v1  ;;  %v214_v4 = vadd.f32 %v205_v2, %v204_v1  ;;  %v207_v5 = vld [vmem:[%s193_s27 + $0x8] sm:$0xff]  ;;  %v225_v14 = vstv %s409_s28  ;;  %p410_p2 = scmp.ne.s32.totalorder %s526_s13, 3 }
  0x28   : > { %v252_v6 = vmul.f32 %v206_v3, %v204_v1  ;;  %v253_v7 = vmul.f32 %v207_v5, %v205_v2  ;;  %v222_v13 = vshrl.u32 %v221_v11, 7  ;;  %v231_v20 = vand.u32 127, %v221_v11  ;;  %s315_s6 = sld [smem:[#allocation6]] (!%p410_p2) }
  0x29   : > { %v215_v9 = vrot.slane %v214_v4, 4  ;;  %s412_s7 = sld [smem:[#allocation6 + $0x1]] (!%p410_p2) }
  0x2a   : > { %v254_v8 = vadd.f32 %v253_v7, %v252_v6  ;;  %v223_v15 = vadd.s32 8, %v222_v13  ;;  %v226_v17 = vadd.s32 %v225_v14, %v222_v13  ;;  %v232_v25 = vcvt.s32.f32 %v231_v20 }
  0x2b   : > { %212 = vadd.xlane.f32.xlu0 %v205_v2  ;;  %v216_v10 = vadd.f32 %v215_v9, %v214_v4  ;;  %v233_v1 = vld [vmem:[#allocation2] sm:$0x1]  ;;  %v251_v2 = vld [vmem:[#allocation3] sm:$0x1] }
  0x2c   : > { %255 = vadd.xlane.f32.xlu1 %v254_v8  ;;  %v227_v18 = vadd.s32 %v225_v14, %v223_v15  ;;  %v228_v21 = vcvt.s32.f32 %v226_v17  ;;  %v267_v4 = vld [vmem:[#allocation4] sm:$0x1]  ;;  %v285_v9 = vld [vmem:[#allocation5] sm:$0x1] }
  0x2d   : > { %v217_v12 = vrot.slane %v216_v10, 2 }
  0x2e   : > { %v229_v23 = vcvt.s32.f32 %v227_v18 }
  0x2f   : > { %v218_v16 = vadd.f32 %v217_v12, %v216_v10 }
  0x31   : > { %v219_v19 = vrot.slane %v218_v16, 1 }
  0x33   : > { %v220_v24 = vadd.f32 %v219_v19, %v218_v16 }
  0x35   : > { %v286_v31 = vmul.f32 %v232_v25, %v220_v24 }
  0x37   : > { %v288_v36 = vsel %vm287_vm2, %v286_v31, 0.0 }
  0xb0   : > { %v211_v22 = vpop.xlane.xlu0 %210 }
  0xb1   : > { %v268_v26 = vmul.f32 %v228_v21, %v211_v22  ;;  %v235_v28 = vsel %vm234_vm1, %v211_v22, 0.0 }
  0xb3   : > { %v270_v33 = vsel %vm234_vm1, %v268_v26, 0.0 }
  0xb4   : > { %v213_v27 = vpop.xlane.xlu0 %212 }
  0xb5   : > { %v236_v29 = vsel %vm234_vm1, %v213_v27, 0.0  ;;  %v269_v30 = vmul.f32 %v229_v23, %v213_v27  ;;  %v256_v37 = vpop.xlane.xlu1 %255 }
  0xb6   : > { %v237_v32 = vadd.f32 %v236_v29, %v235_v28  ;;  %v257_v38 = vrot.slane %v256_v37, 4 }
  0xb7   : > { %v271_v34 = vsel %vm234_vm1, %v269_v30, 0.0 }
  0xb8   : > { %238 = vadd.xlane.f32.xlu1 %v237_v32  ;;  %v272_v35 = vadd.f32 %v271_v34, %v270_v33  ;;  %v258_v39 = vadd.f32 %v257_v38, %v256_v37 }
  0xba   : > { %273 = vadd.xlane.f32.xlu0 %v272_v35  ;;  %v259_v40 = vrot.slane %v258_v39, 2 }
  0xbc   : > { %289 = vadd.xlane.f32.xlu1 %v288_v36  ;;  %v260_v47 = vadd.f32 %v259_v40, %v258_v39 }
  0xbe   : > { %v261_v54 = vrot.slane %v260_v47, 1 }
  0xc0   : > { %v262_v61 = vadd.f32 %v261_v54, %v260_v47 }
 0x141   : > { %v239_v41 = vpop.xlane.xlu1 %238 }
 0x142   : > { %v240_v42 = vrot.slane %v239_v41, 4 }
 0x143   : > { %v274_v43 = vpop.xlane.xlu0 %273 }
 0x144   : > { %v241_v44 = vadd.f32 %v240_v42, %v239_v41  ;;  %v275_v45 = vrot.slane %v274_v43, 4 }
 0x145   : > { %v290_v46 = vpop.xlane.xlu1 %289 }
 0x146   : > { %v242_v48 = vrot.slane %v241_v44, 2  ;;  %v276_v49 = vadd.f32 %v275_v45, %v274_v43  ;;  %v291_v50 = vrot.slane %v290_v46, 4 }
 0x148   : > { %v277_v51 = vrot.slane %v276_v49, 2  ;;  %v292_v52 = vadd.f32 %v291_v50, %v290_v46  ;;  %v243_v53 = vadd.f32 %v242_v48, %v241_v44 }
 0x14a   : > { %v278_v55 = vadd.f32 %v277_v51, %v276_v49  ;;  %v293_v56 = vrot.slane %v292_v52, 2  ;;  %v244_v57 = vrot.slane %v243_v53, 1 }
 0x14c   : > { %v294_v58 = vadd.f32 %v293_v56, %v292_v52  ;;  %v245_v59 = vadd.f32 %v244_v57, %v243_v53  ;;  %v279_v60 = vrot.slane %v278_v55, 1 }
 0x14e   : > { %417 = vpush %v245_v59  ;;  %v280_v62 = vadd.f32 %v279_v60, %v278_v55  ;;  %v295_v63 = vrot.slane %v294_v58, 1 }
 0x14f   : > { %419 = vpush %v262_v61 }
 0x150   : > { %421 = vpush %v280_v62  ;;  %v296_v0 = vadd.f32 %v295_v63, %v294_v58 }
 0x152   : > { %423 = vpush %v296_v0 }
 0x17f   : > { %s418_s29 = spop %417 }
 0x180   : > { %v247_v3 = vstv %s418_s29  ;;  %s420_s30 = spop %419 }
 0x181   : > { %v248_v5 = vadd.f32 %v247_v3, %v233_v1  ;;  %v264_v6 = vstv %s420_s30  ;;  %s422_s4 = spop %421 }
 0x182   : > { %v265_v7 = vadd.f32 %v264_v6, %v251_v2  ;;  %v282_v8 = vstv %s422_s4 }
 0x183   : > { %250 = vst.msk [vmem:[#allocation2] sm:$0x1] %vm249_vm3, %v248_v5  ;;  %v283_v10 = vadd.f32 %v282_v8, %v267_v4  ;;  %s424_s5 = spop %423  ;;  %304 = sbr.rel (%p410_p2) target bundleno = 468 (0x1d4), region = 44 }
 0x184   : > { %266 = vst.msk [vmem:[#allocation3] sm:$0x1] %vm249_vm3, %v265_v7  ;;  %v298_v11 = vstv %s424_s5 }
 0x185   : > { %284 = vst.msk [vmem:[#allocation4] sm:$0x1] %vm249_vm3, %v283_v10  ;;  %v299_v12 = vadd.f32 %v298_v11, %v285_v9 }
 0x187   : > { %300 = vst.msk [vmem:[#allocation5] sm:$0x1] %vm249_vm3, %v299_v12 }
 0x188   : > { %v316_v18 = vstv %s315_s6  ;;  %v320_v19 = vstv %s412_s7 }
 0x18a   : > { %v306_v13 = vld [vmem:[#allocation2] sm:$0x1] }
 0x18b   : > { %454 = vrcp.f32 %v306_v13  ;;  %v305_v22 = vld [vmem:[#allocation3] sm:$0x1] }
 0x18c   : > { %v311_v14 = vld [vmem:[#allocation4] sm:$0x1] }
 0x18d   : > { %v312_v16 = vmul.f32 0.00012207031, %v311_v14 }
 0x18e   : > { %v313_v15 = vld [vmem:[#allocation5] sm:$0x1] }
 0x18f   : > { %v314_v17 = vmul.f32 0.00012207031, %v313_v15  ;;  %v317_v20 = vsub.f32 %v312_v16, %v316_v18 }
 0x191   : > { %v321_v21 = vsub.f32 %v314_v17, %v320_v19  ;;  %v318_v23 = vmul.f32 %v317_v20, %v317_v20 }
 0x193   : > { %v322_v24 = vmul.f32 %v321_v21, %v321_v21 }
 0x195   : > { %v323_v28 = vadd.f32 %v322_v24, %v318_v23 }
 0x198   : > { %v455_v25 = vpop.eup %454 }
 0x199   : > { %v308_v26 = vmul.f32 %v455_v25, %v305_v22 }
 0x19b   : > { %v411_v27 = vadd.f32 -0.5, %v308_v26 }
 0x19d   : > { %v310_v29 = vmul.f32 %v411_v27, %v411_v27 }
 0x19f   : > { %v324_v30 = vadd.f32 %v323_v28, %v310_v29 }
 0x1a1   : > { %425 = vpush %v324_v30 }
 0x1d2   : > { %s426_s8 = spop %425 }
 0x1d3   : > { %328 = sst [smem:[#allocation9]] %s426_s8 }
 0x1d4 PF: > { %p441_p3 = scmp.eq.s32.totalorder %s526_s13, 3  ;;  %s499_s9 = smov [#allocation9]  }
 0x1d6   : > { %432 = dma.smem_to_hbm (%p441_p3), %s499_s9, 16, %s574_s3, [#allocation7]  }
 0x1d7   : > { %490 = dma.done.wait (%p441_p3), [#allocation7], 16  }
 0x1d8   : > { %492 = vsyncadd (%p441_p3), [#allocation7], 4294967280 }
 0x1d9   : > { %342 = sfence }
 0x1da PF: > { %s15_s12 = sadd.s32 1, %s495_s12  }
 0x1db   : > { %p12_p4 = scmp.ge.s32.totalorder %s15_s12, 6  }
 0x1dd   :  { %14 = sbr.rel (!%p12_p4) target bundleno = 2 (0x2), region = 76 }
 0x1e2   :  { %348 = vsyncpa [#allocation7], 1 }
 0x1e3   :  { %350 = vsyncpa [#allocation7 + $0x1], 1 }
 0x1e4   :  { %351 = vsyncpa [#allocation8], 1 }
 0x1e5   :  { %353 = vsyncpa [#allocation8 + $0x1], 1 }

</bundles_post_ra>
